<compile_context>
chip_gen: v7x
topology: tpu7x:2x2x1
jax: 0.10.0
libtpu: 0.0.40
codegen_flags: <defaults>
</compile_context>

<pallas_src>
import jax
import jax.numpy as jnp
import numpy as np
from jax.experimental import pallas as pl
from jax.experimental.pallas import tpu as pltpu


# ---------------------------------------------------------------------------
# Helpers
# ---------------------------------------------------------------------------
def _round_up(x, m):
    return ((x + m - 1) // m) * m


def _pad_and_tile(dim, align, max_tile):
    """Pad `dim` to a multiple of `align`; pick a tile <= max_tile dividing it."""
    padded = _round_up(dim, align)
    if padded <= max_tile:
        return padded, padded
    return _round_up(padded, max_tile), max_tile


# ---------------------------------------------------------------------------
# Kernels
# ---------------------------------------------------------------------------
def _shared_proj_kernel(w_ref, x_ref, b_ref, o_ref):
    # w_ref: (tP, S)   x_ref: (S, tN)   b_ref: (tP, 1)   o_ref: (tP, tN)
    y = jnp.dot(w_ref[...], x_ref[...], preferred_element_type=jnp.float32)
    o_ref[...] = (y + b_ref[...]).astype(o_ref.dtype)


def _indiv_proj_kernel(x_ref, w_ref, b_ref, o_ref):
    # x_ref: (1, Bp, S)  w_ref: (1, S, tP)  b_ref: (1, 1, tP)  o_ref: (1, Bp, tP)
    y = jnp.dot(x_ref[0], w_ref[0], preferred_element_type=jnp.float32)
    o_ref[0] = (y + b_ref[0]).astype(o_ref.dtype)


# ---------------------------------------------------------------------------
# Wrappers
# ---------------------------------------------------------------------------
def channel_projection_shared(x, w, b, *, n_tile=512, p_tile=256):
    """individual=False. x:[B,S,C], w:[P,S], b:[P] -> y:[B,P,C]"""
    B, S, C = x.shape
    P = w.shape[0]
    N = B * C

    Npad, tN = _pad_and_tile(N, 128, n_tile)   # lane / MXU-N dimension
    Ppad, tP = _pad_and_tile(P, 8, p_tile)     # sublane / MXU-M dimension

    # [B,S,C] -> [S, B*C]: merge batch+channels into one lane-dense N dimension.
    xt = jnp.transpose(x, (1, 0, 2)).reshape(S, N)
    xt = jnp.pad(xt, ((0, 0), (0, Npad - N)))
    wp = jnp.pad(w, ((0, Ppad - P), (0, 0)))
    bp = jnp.pad(b, (0, Ppad - P)).reshape(Ppad, 1)

    y = pl.pallas_call(
        _shared_proj_kernel,
        out_shape=jax.ShapeDtypeStruct((Ppad, Npad), x.dtype),
        grid_spec=pltpu.PrefetchScalarGridSpec(
            num_scalar_prefetch=0,
            grid=(Ppad // tP, Npad // tN),
            in_specs=[
                pl.BlockSpec((tP, S), lambda i, j: (i, 0)),
                pl.BlockSpec((S, tN), lambda i, j: (0, j)),
                pl.BlockSpec((tP, 1), lambda i, j: (i, 0)),
            ],
            out_specs=pl.BlockSpec((tP, tN), lambda i, j: (i, j)),
        ),
        compiler_params=pltpu.CompilerParams(
            dimension_semantics=("parallel", "parallel")),
    )(wp, xt, bp)

    # (Ppad, Npad) -> [B, P, C]  (cheap XLA layout plumbing)
    y = y[:P, :N].reshape(P, B, C)
    return jnp.transpose(y, (1, 0, 2))


def channel_projection_individual(x, w, b, *, p_tile=512):
    """individual=True. x:[B,C,S], w:[C,P,S], b:[C,P] -> y:[B,C,P]"""
    B, C, S = x.shape
    P = w.shape[1]

    Bpad = _round_up(B, 8)                      # sublane / MXU-M dimension
    Ppad, tP = _pad_and_tile(P, 128, p_tile)    # lane / MXU-N dimension

    # x: [B,C,S] -> [C, Bpad, S]  (per-channel (B,S) operand)
    xt = jnp.transpose(x, (1, 0, 2))
    xt = jnp.pad(xt, ((0, 0), (0, Bpad - B), (0, 0)))
    # w: [C,P,S] -> [C, S, Ppad]  (so the kernel matmul is (B,S)@(S,P))
    wt = jnp.transpose(w, (0, 2, 1))
    wt = jnp.pad(wt, ((0, 0), (0, 0), (0, Ppad - P)))
    bp = jnp.pad(b, ((0, 0), (0, Ppad - P))).reshape(C, 1, Ppad)

    y = pl.pallas_call(
        _indiv_proj_kernel,
        out_shape=jax.ShapeDtypeStruct((C, Bpad, Ppad), x.dtype),
        grid_spec=pltpu.PrefetchScalarGridSpec(
            num_scalar_prefetch=0,
            grid=(C, Ppad // tP),
            in_specs=[
                pl.BlockSpec((1, Bpad, S), lambda c, j: (c, 0, 0)),
                pl.BlockSpec((1, S, tP), lambda c, j: (c, 0, j)),
                pl.BlockSpec((1, 1, tP), lambda c, j: (c, 0, j)),
            ],
            out_specs=pl.BlockSpec((1, Bpad, tP), lambda c, j: (c, 0, j)),
        ),
        compiler_params=pltpu.CompilerParams(
            dimension_semantics=("parallel", "parallel")),
    )(xt, wt, bp)

    # (C, Bpad, Ppad) -> [B, C, P]
    return jnp.transpose(y[:, :B, :P], (1, 0, 2))


# ---------------------------------------------------------------------------
# Main
# ---------------------------------------------------------------------------
if __name__ == "__main__":
    B, C, S, P = 2, 3, 8, 16   # batch, enc_in, seq_length, pred_length
    key = jax.random.PRNGKey(0)
    kx, kxs, kw, kb, kwi, kbi = jax.random.split(key, 6)

    # PyTorch nn.Linear-style init range: U(-1/sqrt(in), 1/sqrt(in))
    bound = 1.0 / np.sqrt(S)

    # ----- individual = False -----
    x_shared = jax.random.normal(kxs, (B, S, C), dtype=jnp.float32)   # [B, seq, C]
    w_shared = jax.random.uniform(kw, (P, S), minval=-bound, maxval=bound,
                                  dtype=jnp.float32)
    b_shared = jax.random.uniform(kb, (P,), minval=-bound, maxval=bound,
                                  dtype=jnp.float32)

    y_shared = channel_projection_shared(x_shared, w_shared, b_shared)
    y_shared = jax.block_until_ready(y_shared)
    ref_shared = (jnp.einsum("bsc,ps->bpc", x_shared, w_shared)
                  + b_shared[None, :, None])

    # ----- individual = True -----
    x_ind = jax.random.normal(kx, (B, C, S), dtype=jnp.float32)       # [B, C, seq]
    w_ind = jax.random.uniform(kwi, (C, P, S), minval=-bound, maxval=bound,
                               dtype=jnp.float32)
    b_ind = jax.random.uniform(kbi, (C, P), minval=-bound, maxval=bound,
                               dtype=jnp.float32)

    y_ind = channel_projection_individual(x_ind, w_ind, b_ind)
    y_ind = jax.block_until_ready(y_ind)
    ref_ind = jnp.einsum("bcs,cps->bcp", x_ind, w_ind) + b_ind[None]

    ok_shared = bool(jnp.allclose(y_shared, ref_shared, atol=1e-5, rtol=1e-5))
    ok_ind = bool(jnp.allclose(y_ind, ref_ind, atol=1e-5, rtol=1e-5))
    assert ok_shared, "shared (individual=False) branch mismatch"
    assert ok_ind, "individual (individual=True) branch mismatch"

    print("KERNEL_OK")
</pallas_src>

<mosaic_0001>
module attributes {stable_mosaic.version = 11 : i64} {
  func.func @_shared_proj_kernel(%arg0: i32, %arg1: i32, %arg2: memref<16x8xf32, #tpu.memory_space<vmem>>, %arg3: memref<8x128xf32, #tpu.memory_space<vmem>>, %arg4: memref<16x1xf32, #tpu.memory_space<vmem>>, %arg5: memref<16x128xf32, #tpu.memory_space<vmem>>) attributes {dimension_semantics = [#tpu.dimension_semantics<parallel>, #tpu.dimension_semantics<parallel>], iteration_bounds = array<i64: 1, 1>, scalar_prefetch = 0 : i64, scratch_operands = 0 : i64, tpu.core_type = #tpu.core_type<tc>, window_params = [{transform_indices = @transform_0, window_bounds = array<i64: 16, 8>}, {transform_indices = @transform_1, window_bounds = array<i64: 8, 128>}, {transform_indices = @transform_2, window_bounds = array<i64: 16, 1>}, {transform_indices = @transform_3, window_bounds = array<i64: 16, 128>}]} {
    %c0 = arith.constant 0 : index
    %c0_0 = arith.constant 0 : index
    %0 = vector.load %arg2[%c0, %c0_0] : memref<16x8xf32, #tpu.memory_space<vmem>>, vector<16x8xf32>
    %c0_1 = arith.constant 0 : index
    %c0_2 = arith.constant 0 : index
    %1 = vector.load %arg3[%c0_1, %c0_2] : memref<8x128xf32, #tpu.memory_space<vmem>>, vector<8x128xf32>
    %cst = arith.constant dense<0.000000e+00> : vector<16x128xf32>
    %2 = tpu.matmul %0, %1, %cst {dimension_numbers = #tpu.dot_dimension_numbers<[1], [0], [0], [1], [0, 0, 1, 1], [], []>} : vector<16x8xf32>, vector<8x128xf32>, vector<16x128xf32> -> vector<16x128xf32>
    %c0_3 = arith.constant 0 : index
    %c0_4 = arith.constant 0 : index
    %3 = vector.load %arg4[%c0_3, %c0_4] : memref<16x1xf32, #tpu.memory_space<vmem>>, vector<16x1xf32>
    %4 = vector.broadcast %3 : vector<16x1xf32> to vector<16x128xf32>
    %5 = arith.addf %2, %4 : vector<16x128xf32>
    %c0_5 = arith.constant 0 : index
    %c0_6 = arith.constant 0 : index
    %6 = vector.load %arg5[%c0_5, %c0_6] : memref<16x128xf32, #tpu.memory_space<vmem>>, vector<16x128xf32>
    tpu.vector_store %arg5[%c0_5, %c0_6], %5 {strides = array<i32>} : memref<16x128xf32, #tpu.memory_space<vmem>>, vector<16x128xf32>,
    return
  }
  func.func @transform_0(%arg0: i32, %arg1: i32) -> (i32, i32) {
    %c0_i32 = arith.constant 0 : i32
    %c0_i32_0 = arith.constant 0 : i32
    return %arg0, %c0_i32 : i32, i32
  }
  func.func @transform_1(%arg0: i32, %arg1: i32) -> (i32, i32) {
    %c0_i32 = arith.constant 0 : i32
    %c0_i32_0 = arith.constant 0 : i32
    return %c0_i32, %arg1 : i32, i32
  }
  func.func @transform_2(%arg0: i32, %arg1: i32) -> (i32, i32) {
    %c0_i32 = arith.constant 0 : i32
    %c0_i32_0 = arith.constant 0 : i32
    return %arg0, %c0_i32 : i32, i32
  }
  func.func @transform_3(%arg0: i32, %arg1: i32) -> (i32, i32) {
    %c0_i32 = arith.constant 0 : i32
    return %arg0, %arg1 : i32, i32
  }
}

</mosaic_0001>

<bundles_post_ra>
// kernel: tpu_custom_call.1
= control target key start
LH: loop header
LB: loop body
LE: loop exit
PB: predicated region body
PF: predicated region fallthrough
CT: control target
= control target key end

     0   :  { %vm30_vm0 = vcmask 64512   ;;  %s220_s0 = inlined_call_operand.vmem [shape: f32[16,8], index: 0, kind: input, shape index: {}]   ;;  %s221_s1 = inlined_call_operand.vmem [shape: f32[8,128], index: 1, kind: input, shape index: {}]   ;;  %s222_s2 = inlined_call_operand.vmem [shape: f32[16,1], index: 2, kind: input, shape index: {}]   ;;  %s223_s3 = inlined_call_operand.hbm [shape: f32[16,128], index: 3, kind: output, shape index: {}]  }
   0x1   :  { %v17_v0 = vld [vmem:[%s221_s1] sm:$0xff]  ;;  %v16_v2 = vld [vmem:[%s220_s0 + $0x8] sm:$0xff] }
   0x2   :  { %v15_v1 = vld [vmem:[%s220_s0] sm:$0xff]  ;;  %135 = vmatprep.subr.mxu0 %v17_v0 }
   0x3   :  { %137 = vmatprep.mubr.msk.f32.mxu0 %vm30_vm0, %v15_v1  ;;  %v18_v3 = vld [vmem:[%s222_s2] sm:$0xff] }
   0x4   :  { %8 = vsyncpa [#allocation3], 0  ;;  %136 = vmatpush3.msra.mxu0 %v17_v0  ;;  %v169_v4 = vmov 0   ;;  %v19_v5 = vld [vmem:[%s222_s2 + $0x8] sm:$0xff]  ;;  %s170_s21 = smov [#allocation2]  }
   0x5   :  { %144 = vset.pattern.permute.xlu0 %v169_v4  ;;  %138 = vmatmul.mubr.msk.f32.vlgmr.msra.gmra.mrb[0].mxu0 %vm30_vm0, %v16_v2  ;;  %s119_s0 = sshll.u32 %s170_s21, 4  ;;  %s120_s0 = int_to_ptr.vmem [resolvable:$true] %s119_s0 }
   0x6   :  { %22 = vperm.xlu0 %144, %v18_v3   ;;  %s145_s22 = scalar_lea.vmem %s120_s0, 256  ;;  %p150_p1 = scmp.lt.s32.totalorder %s120_s0, %s120_s0 }
   0x7   :  { %p146_p0 = scmp.ne.s32.totalorder %s120_s0, %s145_s22  ;;  %p151_p2 = scmp.lt.s32.totalorder %s145_s22, %s145_s22 }
   0x9   :  { %p152_p3 = por %p151_p2, %p150_p1 }
   0xa   :  { %27 = vperm.xlu0 %144, %v19_v5  }
   0xb   :  { %p153_p4 = pnand %p152_p3, %p146_p0 }
  0x85   :  { %v23_v6 = vpop.permute.xlu0 %22 }
  0x89   :  { %v28_v7 = vpop.permute.xlu0 %27 }
  0xd8   :  { %v139_v8 = vpop.f32.mrb[0].mxu0 }
  0xd9   :  { %v109_v9 = vadd.f32 %v139_v8, %v28_v7  ;;  %v103_v10 = vpop.f32.mrb[1].mxu0 }
  0xda   :  { %v104_v11 = vadd.f32 %v103_v10, %v23_v6 }
  0xdb   :  { %113 = vst [vmem:[#allocation2 + $0x8] sm:$0xff] %v109_v9 }
  0xdc   :  { %112 = vst [vmem:[#allocation2] sm:$0xff] %v104_v11 }
  0xdd   :  { %156 = shalt.err (!%p153_p4)
}
  0xde   :  { %s157_s24 = scalar_lea.hbm %s223_s3, 256 }
  0xdf   :  { %p158_p5 = scmp.ne.s32.totalorder %s223_s3, %s157_s24  ;;  %p161_p6 = scmp.lt.u32.totalorder %s157_s24, %s223_s3 }
  0xe1   :  { %p163_p7 = pnand %p161_p6, %p158_p5 }
  0xe3   :  { %166 = shalt.err (!%p163_p7)
}
  0xe4   :  { %s171_s29 = smov 128   ;;  %s172_s30 = smov 8  }
  0xe5   :  { %125 = dma.vmem_to_hbm [thread:$0]  %s120_s0, 256, %s223_s3, [#allocation3], %s171_s29, %s171_s29, %s172_s30  }
  0xe6   :  { %167 = dma.done.wait [#allocation3], 256  }
  0xe7   :  { %168 = vsyncadd [#allocation3], 4294967040 }
  0xe8   :  { %129 = vsyncpa [#allocation3], 1 }

</bundles_post_ra>
